<compile_context>
chip_gen: v6e
topology: v6e:2x2x1
jax: 0.10.0
libtpu: 0.0.40
codegen_flags: <defaults>
</compile_context>

<pallas_src>
import functools
import math

import jax
import jax.numpy as jnp
from jax import lax
from jax.experimental import pallas as pl
from jax.experimental.pallas import tpu as pltpu


_VMEM_LIMIT_BYTES = 32 * 1024 * 1024   # safe on v5e/v6e (128 MiB) and v7x (64 MiB)
_TILE_BUDGET_BYTES = 8 * 1024 * 1024   # budget for one (double-buffered) input tile


def _round_up(x, m):
    return ((x + m - 1) // m) * m


def _pick_tile(total, bytes_per_sample, *, align, max_tile):
    """Largest align-multiple tile keeping 2x (double-buffered) tiles in budget."""
    cap = (_TILE_BUDGET_BYTES // (2 * bytes_per_sample)) // align * align
    cap = max(align, cap)
    cap = min(cap, max_tile)
    return min(cap, _round_up(total, align))


def _pow_static(base, gamma):
    """base**gamma with trace-time special cases for integer gamma (saves EUP)."""
    g = float(gamma)
    if g == 0.0:
        return jnp.ones_like(base)
    if g == int(g) and 0 < int(g) <= 8:
        out = base
        for _ in range(int(g) - 1):
            out = out * base
        return out
    return base ** g


def _focal_nchw_kernel(x_ref, t_ref, a_ref, out_ref, acc_ref, *, gamma):
    """Logits block (C, S_TILE): classes on sublanes, samples on lanes."""
    s = pl.program_id(1)

    @pl.when(s == 0)
    def _():
        acc_ref[...] = jnp.zeros_like(acc_ref)

    x = x_ref[...].astype(jnp.float32)                       # (C, S_TILE)
    t = t_ref[...]                                           # (1, S_TILE) int32
    a = a_ref[...].astype(jnp.float32)                       # (C, 1)

    # log-softmax along the class (sublane) axis
    m = jnp.max(x, axis=0, keepdims=True)                    # (1, S_TILE)
    shifted = x - m
    e = jnp.exp(shifted)
    sum_e = jnp.sum(e, axis=0, keepdims=True)                # (1, S_TILE)

    # per-sample gather via one-hot on the class axis; padded samples carry the
    # sentinel class == C, so onehot == 0 -> alpha_t == 0 -> loss == 0 (no mask).
    cls = lax.broadcasted_iota(jnp.int32, x.shape, 0)        # (C, S_TILE)
    onehot = (cls == t).astype(jnp.float32)

    shifted_t = jnp.sum(onehot * shifted, axis=0, keepdims=True)   # (1, S_TILE)
    e_t = jnp.sum(onehot * e, axis=0, keepdims=True)
    alpha_t = jnp.sum(onehot * a, axis=0, keepdims=True)

    log_pt = shifted_t - jnp.log(sum_e)
    pt = e_t / sum_e                                         # reuse exp(shifted)
    focal = _pow_static(jnp.maximum(1.0 - pt, 0.0), gamma)
    acc_ref[...] += focal * (-alpha_t * log_pt)              # per-lane accumulator

    @pl.when(s == pl.num_programs(1) - 1)
    def _():
        out_ref[...] = jnp.sum(acc_ref[...], axis=1, keepdims=True)   # (1, 1)


def _focal_nc_kernel(x_ref, t_ref, a_ref, out_ref, acc_ref, *, gamma):
    """Logits block (TM, C): samples on sublanes, classes on lanes."""
    i = pl.program_id(0)

    @pl.when(i == 0)
    def _():
        acc_ref[...] = jnp.zeros_like(acc_ref)

    x = x_ref[...].astype(jnp.float32)                       # (TM, C)
    t = t_ref[...]                                           # (TM, 1) int32
    a = a_ref[...].astype(jnp.float32)                       # (1, C)

    m = jnp.max(x, axis=-1, keepdims=True)
    shifted = x - m
    e = jnp.exp(shifted)
    sum_e = jnp.sum(e, axis=-1, keepdims=True)

    col = lax.broadcasted_iota(jnp.int32, x.shape, 1)
    onehot = (col == t).astype(jnp.float32)                  # sentinel rows -> 0

    shifted_t = jnp.sum(onehot * shifted, axis=-1, keepdims=True)
    e_t = jnp.sum(onehot * e, axis=-1, keepdims=True)
    alpha_t = jnp.sum(onehot * a, axis=-1, keepdims=True)

    log_pt = shifted_t - jnp.log(sum_e)
    pt = e_t / sum_e
    focal = _pow_static(jnp.maximum(1.0 - pt, 0.0), gamma)
    acc_ref[...] += focal * (-alpha_t * log_pt)              # per-row accumulator

    @pl.when(i == pl.num_programs(0) - 1)
    def _():
        out_ref[...] = jnp.sum(acc_ref[...], axis=0, keepdims=True)   # (1, 1)


def focal_loss(logits, target, alpha=None, gamma=0.0, reduction="mean"):
    """Pallas implementation of FocalLoss.forward (mean / sum reductions)."""
    logits = jnp.asarray(logits)                   # keep input dtype (bf16 ok)
    target = jnp.asarray(target).astype(jnp.int32)
    gamma = float(gamma)

    c = logits.shape[1] if logits.ndim > 2 else logits.shape[-1]
    alpha_vec = (jnp.ones((c,), jnp.float32) if alpha is None
                 else jnp.asarray(alpha, jnp.float32))
    itemsize = logits.dtype.itemsize

    if logits.ndim > 2:
        # NCHW...-style: keep the HBM layout; classes land on sublanes in-kernel.
        b = logits.shape[0]
        spatial = math.prod(logits.shape[2:])
        n = b * spatial

        x3 = logits.reshape(b, c, spatial)          # free reshape, no transpose
        t2 = target.reshape(b, spatial)

        s_tile = _pick_tile(spatial, c * itemsize + 4, align=128, max_tile=8192)
        s_pad = _round_up(spatial, s_tile)
        if s_pad != spatial:
            x3 = jnp.pad(x3, ((0, 0), (0, 0), (0, s_pad - spatial)))
            t2 = jnp.pad(t2, ((0, 0), (0, s_pad - spatial)), constant_values=c)
        t3 = t2.reshape(b, 1, s_pad)

        kernel = functools.partial(_focal_nchw_kernel, gamma=gamma)
        partials = pl.pallas_call(
            kernel,
            out_shape=jax.ShapeDtypeStruct((b, 1, 1), jnp.float32),
            grid_spec=pltpu.PrefetchScalarGridSpec(
                num_scalar_prefetch=0,
                grid=(b, s_pad // s_tile),
                in_specs=[
                    pl.BlockSpec((None, c, s_tile), lambda bi, si: (bi, 0, si)),
                    pl.BlockSpec((None, 1, s_tile), lambda bi, si: (bi, 0, si)),
                    pl.BlockSpec((c, 1), lambda bi, si: (0, 0)),
                ],
                out_specs=pl.BlockSpec((None, 1, 1), lambda bi, si: (bi, 0, 0)),
                scratch_shapes=[pltpu.VMEM((1, s_tile), jnp.float32)],
            ),
            compiler_params=pltpu.CompilerParams(
                dimension_semantics=("parallel", "arbitrary"),
                vmem_limit_bytes=_VMEM_LIMIT_BYTES),
        )(x3, t3, alpha_vec.reshape(c, 1))
        total = jnp.sum(partials)
    else:
        # Plain (N, C) classification path.
        n = logits.shape[0]
        tm = _pick_tile(n, c * itemsize + 4, align=8, max_tile=2048)
        n_pad = _round_up(n, tm)
        x2, t1 = logits, target
        if n_pad != n:
            x2 = jnp.pad(x2, ((0, n_pad - n), (0, 0)))
            t1 = jnp.pad(t1, (0, n_pad - n), constant_values=c)   # sentinel class
        t2 = t1.reshape(n_pad, 1)

        kernel = functools.partial(_focal_nc_kernel, gamma=gamma)
        # TODO(synk): the (N, C) path runs on a single TensorCore; the v7x
        # dual-TC split is only wired up for the ndim > 2 path (parallel B axis).
        total = pl.pallas_call(
            kernel,
            out_shape=jax.ShapeDtypeStruct((1, 1), jnp.float32),
            grid_spec=pltpu.PrefetchScalarGridSpec(
                num_scalar_prefetch=0,
                grid=(n_pad // tm,),
                in_specs=[
                    pl.BlockSpec((tm, c), lambda i: (i, 0)),
                    pl.BlockSpec((tm, 1), lambda i: (i, 0)),
                    pl.BlockSpec((1, c), lambda i: (0, 0)),
                ],
                out_specs=pl.BlockSpec((1, 1), lambda i: (0, 0)),
                scratch_shapes=[pltpu.VMEM((tm, 1), jnp.float32)],
            ),
            compiler_params=pltpu.CompilerParams(
                dimension_semantics=("arbitrary",),
                vmem_limit_bytes=_VMEM_LIMIT_BYTES),
        )(x2, t2, alpha_vec.reshape(1, c))[0, 0]

    if reduction == "mean":
        loss = total / n
        if alpha is not None:
            loss = loss / jnp.sum(alpha_vec)
        return loss
    elif reduction == "sum":
        return total
    # TODO(synk): reduction='none' would need a per-sample output; only mean/sum here.
    raise NotImplementedError("reduction must be 'mean' or 'sum'")


def _focal_loss_ref(logits, target, alpha, gamma, reduction="mean"):
    """Plain-JAX reference mirroring the PyTorch module."""
    if logits.ndim > 2:
        c = logits.shape[1]
        perm = (0,) + tuple(range(2, logits.ndim)) + (1,)
        logits = jnp.transpose(logits, perm).reshape(-1, c)
        target = target.reshape(-1)
    logits = logits.astype(jnp.float32)
    log_p = jax.nn.log_softmax(logits, axis=-1)
    rows = jnp.arange(logits.shape[0])
    log_pt = log_p[rows, target]
    w = (jnp.ones(logits.shape[1], jnp.float32) if alpha is None
         else jnp.asarray(alpha, jnp.float32))
    ce = -w[target] * log_pt
    loss = (1.0 - jnp.exp(log_pt)) ** gamma * ce
    if reduction == "mean":
        out = loss.mean()
        if alpha is not None:
            out = out / w.sum()
        return out
    return loss.sum()


if __name__ == "__main__":
    key = jax.random.PRNGKey(0)
    k1, k2, k3, k4, k5 = jax.random.split(key, 5)

    # 4-D NCHW segmentation-style case (primary path).
    B, C, H, W = 2, 4, 16, 16
    x = jax.random.normal(k1, (B, C, H, W), dtype=jnp.float32)
    target = jax.random.randint(k2, (B, H, W), 0, C, dtype=jnp.int32)
    alpha = jax.random.uniform(k3, (C,), minval=0.5, maxval=1.5)
    gamma = 2.0

    out = focal_loss(x, target, alpha=alpha, gamma=gamma, reduction="mean")
    out = jax.block_until_ready(out)
    ref = _focal_loss_ref(x, target, alpha, gamma, reduction="mean")
    assert jnp.allclose(out, ref, rtol=2e-5, atol=1e-6), (out, ref)

    # 2-D classification-style case (secondary path), sum reduction, no alpha.
    N, C2 = 8, 32
    x2 = jax.random.normal(k4, (N, C2), dtype=jnp.float32)
    t2 = jax.random.randint(k5, (N,), 0, C2, dtype=jnp.int32)
    out2 = focal_loss(x2, t2, alpha=None, gamma=0.0, reduction="sum")
    out2 = jax.block_until_ready(out2)
    ref2 = _focal_loss_ref(x2, t2, None, 0.0, reduction="sum")
    assert jnp.allclose(out2, ref2, rtol=2e-5, atol=1e-6), (out2, ref2)

    print("KERNEL_OK")
</pallas_src>

<mosaic_0001>
module attributes {stable_mosaic.version = 11 : i64} {
  func.func @_focal_nchw_kernel(%arg0: i32, %arg1: i32, %arg2: memref<1x4x256xf32, #tpu.memory_space<vmem>>, %arg3: memref<1x1x256xi32, #tpu.memory_space<vmem>>, %arg4: memref<4x1xf32, #tpu.memory_space<vmem>>, %arg5: memref<1x1x1xf32, #tpu.memory_space<vmem>>, %arg6: memref<1x256xf32, #tpu.memory_space<vmem>>) attributes {dimension_semantics = [#tpu.dimension_semantics<parallel>, #tpu.dimension_semantics<arbitrary>], iteration_bounds = array<i64: 2, 1>, scalar_prefetch = 0 : i64, scratch_operands = 1 : i64, tpu.core_type = #tpu.core_type<tc>, window_params = [{transform_indices = @transform_0, window_bounds = array<i64: 1, 4, 256>}, {transform_indices = @transform_1, window_bounds = array<i64: 1, 1, 256>}, {pipeline_mode = #tpu.pipeline_mode<synchronous>, transform_indices = @transform_2, window_bounds = array<i64: 4, 1>}, {transform_indices = @transform_3, window_bounds = array<i64: 1, 1, 1>}]} {
    %c0_i32 = arith.constant 0 : i32
    %0 = arith.cmpi eq, %arg1, %c0_i32 : i32
    %1 = arith.extui %0 : i1 to i32
    %c0_i32_0 = arith.constant 0 : i32
    %2 = arith.cmpi ne, %1, %c0_i32_0 : i32
    scf.if %2 {
      %cst_21 = arith.constant 0.000000e+00 : f32
      %48 = vector.broadcast %cst_21 : f32 to vector<1x256xf32>
      %c0_22 = arith.constant 0 : index
      %c0_23 = arith.constant 0 : index
      %49 = vector.load %arg6[%c0_22, %c0_23] : memref<1x256xf32, #tpu.memory_space<vmem>>, vector<1x256xf32>
      tpu.vector_store %arg6[%c0_22, %c0_23], %48 {strides = array<i32>} : memref<1x256xf32, #tpu.memory_space<vmem>>, vector<1x256xf32>,
    } else {
    }
    %c0 = arith.constant 0 : index
    %c0_1 = arith.constant 0 : index
    %c0_2 = arith.constant 0 : index
    %3 = vector.load %arg2[%c0, %c0_1, %c0_2] : memref<1x4x256xf32, #tpu.memory_space<vmem>>, vector<1x4x256xf32>
    %4 = vector.shape_cast %3 : vector<1x4x256xf32> to vector<4x256xf32>
    %c0_3 = arith.constant 0 : index
    %c0_4 = arith.constant 0 : index
    %c0_5 = arith.constant 0 : index
    %5 = vector.load %arg3[%c0_3, %c0_4, %c0_5] : memref<1x1x256xi32, #tpu.memory_space<vmem>>, vector<1x1x256xi32>
    %6 = vector.shape_cast %5 : vector<1x1x256xi32> to vector<1x256xi32>
    %c0_6 = arith.constant 0 : index
    %c0_7 = arith.constant 0 : index
    %7 = vector.load %arg4[%c0_6, %c0_7] : memref<4x1xf32, #tpu.memory_space<vmem>>, vector<4x1xf32>
    %cst = arith.constant dense<0xFF800000> : vector<256xf32>
    %8 = vector.multi_reduction <maximumf>, %4, %cst [0] : vector<4x256xf32> to vector<256xf32>
    %9 = vector.shape_cast %8 : vector<256xf32> to vector<1x256xf32>
    %10 = vector.broadcast %9 : vector<1x256xf32> to vector<4x256xf32>
    %11 = arith.subf %4, %10 : vector<4x256xf32>
    %12 = math.exp %11 : vector<4x256xf32>
    %cst_8 = arith.constant dense<0.000000e+00> : vector<256xf32>
    %13 = vector.multi_reduction <add>, %12, %cst_8 [0] : vector<4x256xf32> to vector<256xf32>
    %14 = vector.shape_cast %13 : vector<256xf32> to vector<1x256xf32>
    %15 = tpu.iota {dimensions = array<i32: 0>} : vector<4x256xi32>
    %16 = vector.broadcast %6 : vector<1x256xi32> to vector<4x256xi32>
    %17 = arith.cmpi eq, %15, %16 : vector<4x256xi32>
    %18 = arith.extui %17 : vector<4x256xi1> to vector<4x256xi32>
    %19 = arith.sitofp %18 : vector<4x256xi32> to vector<4x256xf32>
    %20 = arith.mulf %19, %11 : vector<4x256xf32>
    %cst_9 = arith.constant dense<0.000000e+00> : vector<256xf32>
    %21 = vector.multi_reduction <add>, %20, %cst_9 [0] : vector<4x256xf32> to vector<256xf32>
    %22 = vector.shape_cast %21 : vector<256xf32> to vector<1x256xf32>
    %23 = arith.mulf %19, %12 : vector<4x256xf32>
    %cst_10 = arith.constant dense<0.000000e+00> : vector<256xf32>
    %24 = vector.multi_reduction <add>, %23, %cst_10 [0] : vector<4x256xf32> to vector<256xf32>
    %25 = vector.shape_cast %24 : vector<256xf32> to vector<1x256xf32>
    %26 = vector.broadcast %7 : vector<4x1xf32> to vector<4x256xf32>
    %27 = arith.mulf %19, %26 : vector<4x256xf32>
    %cst_11 = arith.constant dense<0.000000e+00> : vector<256xf32>
    %28 = vector.multi_reduction <add>, %27, %cst_11 [0] : vector<4x256xf32> to vector<256xf32>
    %29 = vector.shape_cast %28 : vector<256xf32> to vector<1x256xf32>
    %30 = math.log %14 : vector<1x256xf32>
    %31 = arith.subf %22, %30 : vector<1x256xf32>
    %32 = arith.divf %25, %14 : vector<1x256xf32>
    %cst_12 = arith.constant 1.000000e+00 : f32
    %33 = vector.broadcast %cst_12 : f32 to vector<1x256xf32>
    %34 = arith.subf %33, %32 : vector<1x256xf32>
    %cst_13 = arith.constant 0.000000e+00 : f32
    %35 = vector.broadcast %cst_13 : f32 to vector<1x256xf32>
    %36 = arith.maximumf %34, %35 : vector<1x256xf32>
    %37 = arith.mulf %36, %36 : vector<1x256xf32>
    %c0_14 = arith.constant 0 : index
    %c0_15 = arith.constant 0 : index
    %38 = vector.load %arg6[%c0_14, %c0_15] : memref<1x256xf32, #tpu.memory_space<vmem>>, vector<1x256xf32>
    %cst_16 = arith.constant 0.000000e+00 : f32
    %39 = vector.broadcast %cst_16 : f32 to vector<1x256xf32>
    %40 = arith.subf %39, %29 : vector<1x256xf32>
    %41 = arith.mulf %40, %31 : vector<1x256xf32>
    %42 = arith.mulf %37, %41 : vector<1x256xf32>
    %43 = arith.addf %38, %42 : vector<1x256xf32>
    %c0_17 = arith.constant 0 : index
    %c0_18 = arith.constant 0 : index
    %44 = vector.load %arg6[%c0_17, %c0_18] : memref<1x256xf32, #tpu.memory_space<vmem>>, vector<1x256xf32>
    tpu.vector_store %arg6[%c0_17, %c0_18], %43 {strides = array<i32>} : memref<1x256xf32, #tpu.memory_space<vmem>>, vector<1x256xf32>,
    %c0_i32_19 = arith.constant 0 : i32
    %45 = arith.cmpi eq, %arg1, %c0_i32_19 : i32
    %46 = arith.extui %45 : i1 to i32
    %c0_i32_20 = arith.constant 0 : i32
    %47 = arith.cmpi ne, %46, %c0_i32_20 : i32
    scf.if %47 {
      %c0_21 = arith.constant 0 : index
      %c0_22 = arith.constant 0 : index
      %48 = vector.load %arg6[%c0_21, %c0_22] : memref<1x256xf32, #tpu.memory_space<vmem>>, vector<1x256xf32>
      %cst_23 = arith.constant dense<0.000000e+00> : vector<1xf32>
      %49 = vector.multi_reduction <add>, %48, %cst_23 [1] : vector<1x256xf32> to vector<1xf32>
      %50 = vector.shape_cast %49 : vector<1xf32> to vector<1x1xf32>
      %c0_24 = arith.constant 0 : index
      %c0_25 = arith.constant 0 : index
      %c0_26 = arith.constant 0 : index
      %51 = vector.load %arg5[%c0_24, %c0_25, %c0_26] : memref<1x1x1xf32, #tpu.memory_space<vmem>>, vector<1x1x1xf32>
      %52 = vector.shape_cast %51 : vector<1x1x1xf32> to vector<1x1xf32>
      %53 = vector.shape_cast %50 : vector<1x1xf32> to vector<1x1x1xf32>
      tpu.vector_store %arg5[%c0_24, %c0_25, %c0_26], %53 {strides = array<i32>} : memref<1x1x1xf32, #tpu.memory_space<vmem>>, vector<1x1x1xf32>,
    } else {
    }
    return
  }
  func.func @transform_0(%arg0: i32, %arg1: i32) -> (i32, i32, i32) {
    %c0_i32 = arith.constant 0 : i32
    %c0_i32_0 = arith.constant 0 : i32
    return %arg0, %c0_i32, %arg1 : i32, i32, i32
  }
  func.func @transform_1(%arg0: i32, %arg1: i32) -> (i32, i32, i32) {
    %c0_i32 = arith.constant 0 : i32
    %c0_i32_0 = arith.constant 0 : i32
    return %arg0, %c0_i32, %arg1 : i32, i32, i32
  }
  func.func @transform_2(%arg0: i32, %arg1: i32) -> (i32, i32) {
    %c0_i32 = arith.constant 0 : i32
    %c0_i32_0 = arith.constant 0 : i32
    %c0_i32_1 = arith.constant 0 : i32
    return %c0_i32, %c0_i32_0 : i32, i32
  }
  func.func @transform_3(%arg0: i32, %arg1: i32) -> (i32, i32, i32) {
    %c0_i32 = arith.constant 0 : i32
    %c0_i32_0 = arith.constant 0 : i32
    %c0_i32_1 = arith.constant 0 : i32
    return %arg0, %c0_i32, %c0_i32_0 : i32, i32, i32
  }
}

</mosaic_0001>

<bundles_post_ra>
// kernel: tpu_custom_call.1
= control target key start
LH: loop header
LB: loop body
LE: loop exit
PB: predicated region body
PF: predicated region fallthrough
CT: control target
= control target key end

     0   :  { %8 = vsyncpa [#allocation4], 0  ;;  %s858_s0 = inlined_call_operand.hbm [shape: f32[2,4,256], index: 0, kind: input, shape index: {}]   ;;  %s859_s1 = inlined_call_operand.vmem [shape: s32[2,1,256], index: 1, kind: input, shape index: {}]   ;;  %s860_s2 = inlined_call_operand.vmem [shape: f32[4,1], index: 2, kind: input, shape index: {}]   ;;  %s861_s3 = inlined_call_operand.vmem [shape: f32[2,1,1], index: 3, kind: output, shape index: {}]  }
   0x1   :  { %10 = vsyncpa [#allocation4 + $0x1], 0  ;;  %s705_s12 = smov 0   ;;  %s707_s13 = smov 0  }
   0x2   :  { %s709_s14 = smov 0   ;;  %s711_s15 = smov 0  }
   0x3   :  { %s713_s16 = smov 0   ;;  %s715_s17 = smov 0  }
   0x4 LB: > { %s516_s18 = sadd.s32 4294967295, %s679_s17   ;;  %s28_s19 = sadd.s32 1, %s675_s16  ;;  %s679_s17 = sphi %s715_s17, %s16_s17   ;;  %s675_s16 = sphi %s713_s16, %s871_s16   ;;  %s671_s15 = sphi %s711_s15, %s870_s15   ;;  %s667_s14 = sphi %s709_s14, %s869_s14   ;;  %s663_s13 = sphi %s707_s13, %s868_s13   ;;  %s659_s12 = sphi %s705_s12, %s867_s12  }
   0x5   : > { %p30_p0 = scmp.ge.s32.totalorder %s28_s19, 2  ;;  %s37_s20 = sadd.s32 1, %s667_s14 }
   0x6   : > { %p44_p1 = scmp.ne.s32.totalorder %s667_s14, %s663_s13  ;;  %p45_p2 = scmp.eq.s32.totalorder %s679_s17, 0 }
   0x7   : > { %s873_s19 = smov (%p30_p0, %s28_s19), 0  ;;  %p50_p4 = scmp.ne.s32.totalorder %s663_s13, %s659_s12 }
   0x8   : > { %p741_p3 = por %p45_p2, %p44_p1  ;;  %s32_s22 = ssub.s32 %s675_s16, %s873_s19 }
   0x9   : > { %p51_p5 = scmp.eq.s32.totalorder %s516_s18, 0  ;;  %p35_p6 = scmp.eq.s32.totalorder %s32_s22, 0 }
   0xa   : > { %p537_p8 = scmp.lt.s32.totalorder %s679_s17, 2  ;;  %s152_s25 = sand.u32 1, %s667_s14  }
   0xb   : > { %p748_p7 = por %p51_p5, %p50_p4  ;;  %s530_s26 = sshll.u32 %s675_s16, 7 }
   0xc   : > { %s754_s24 = scalar_select %p35_p6, %s667_s14, %s37_s20  }
   0xd   : > { %s520_s27 = sshll.u32 %s152_s25, 3  ;;  %s164_s30 = scalar_lea.hbm %s858_s0, %s530_s26 }
   0xe   : > { %s156_s4 = scalar_lea.vmem [#allocation3], %s520_s27  ;;  %p763_p9 = pnand %p537_p8, %p741_p3 }
   0xf   : > { %s166_s5 = sshll.u32 %s156_s4, 4  ;;  %p523_p10 = scmp.ge.s32.totalorder %s679_s17, 1  ;;  %s167_s5 = int_to_ptr.vmem [resolvable:$true] %s166_s5 }
  0x10   : > { %p183_p11 = scmp.lt.s32.totalorder %s679_s17, 3  ;;  %s153_s7 = scalar_lea.sflag [#allocation4], %s152_s25 }
  0x11   : > { %p603_p12 = pneg %p763_p9  ;;  %s614_s8 = scalar_lea.vmem %s167_s5, 128 }
  0x12   : > { %p615_p13 = scmp.ne.s32.totalorder %s167_s5, %s614_s8  ;;  %s681_s9 = smov [#allocation3]  }
  0x13   : > { %s619_s10 = sshll.u32 %s681_s9, 4  ;;  %s620_s10 = int_to_ptr.vmem [resolvable:$false] %s619_s10 }
  0x14   : > { %p617_p0 = pnand %p615_p13, %p603_p12  ;;  %s621_s11 = scalar_lea.vmem %s620_s10, 256 }
  0x15   : > { %p622_p2 = scmp.lt.s32.totalorder %s167_s5, %s620_s10  ;;  %p623_p3 = scmp.lt.s32.totalorder %s621_s11, %s614_s8 }
  0x16   : > { %p618_p1 = pneg %p617_p0 }
  0x17   : > { %p624_p4 = por %p623_p3, %p622_p2 }
  0x19   : > { %p625_p5 = pnand %p624_p4, %p618_p1 }
  0x1b   : > { %628 = shalt.err (!%p625_p5)
}
  0x1c   : > { %536 = dma.hbm_to_vmem [thread:$0]  (!%p763_p9), %s164_s30, 128, %s167_s5, %s153_s7  }
  0x1d   : > { %p184_p6 = pnand %p523_p10, %p183_p11 }
  0x1e   : > { %s189_s12 = sand.u32 (!%p184_p6), 1, %s663_s13  }
  0x1f   : > { %187 = sbr.rel (%p184_p6) target bundleno = 344 (0x158), region = 32  ;;  %s524_s18 = sshll.u32 (!%p184_p6), %s189_s12, 3 }
  0x20   : > { %s190_s20 = scalar_lea.sflag (!%p184_p6), [#allocation4], %s189_s12  ;;  %s193_s21 = scalar_lea.vmem (!%p184_p6), [#allocation3], %s524_s18 }
  0x24   : > { %654 = dma.done.wait (%p748_p7), %s190_s20, 128  }
  0x25   : > { %656 = vsyncadd (%p748_p7), %s190_s20, 4294967168  ;;  %p224_p8 = scmp.lt.s32.totalorder %s671_s15, 1  ;;  %v239_v0 = vlaneseq  ;;  %v682_v1 = vmov 0   ;;  %v683_v4 = vmov 0.0   ;;  %v246_v7 = vld [vmem:[%s860_s2] sm:$0xf] }
  0x26   : > { %589 = vset.pattern.permute.xlu0 %v682_v1  ;;  %v244_v13 = vld [vmem:[%s193_s21] sm:$0xff]  ;;  %vm250_vm3 = vcmask 1043456   ;;  %vm423_vm4 = vcmask 1040384   ;;  %vm429_vm5 = vcmask 0  }
  0x27   : > { %s875_s15 = smov (!%p224_p8, %s671_s15), 1  ;;  %vm786_vm0 = vcmp.lt.s32.totalorder %v239_v0, 256  ;;  %v790_v3 = vshrl.u32 %v239_v0, 7  ;;  %342 = vperm.xlu0 %589, %v246_v7   ;;  %v248_v14 = vcombine.high %v244_v13, %v244_v13  ;;  %v251_v15 = vsel %vm250_vm3, %v244_v13, -inf }
  0x28   : > { %243 = vst.msk [vmem:[#allocation2] sm:$0x3] %vm786_vm0, %v683_v4  ;;  %s525_s22 = sshll.u32 %s875_s15, 1  ;;  %v252_v17 = vrot.slane %v251_v15, 4  ;;  %s234_s4 = scalar_lea.vmem %s861_s3, %s875_s15 }
  0x29   : > { %v293_v5 = vsub.s32 0, %v790_v3  ;;  %v297_v6 = vsub.s32 1, %v790_v3  ;;  %s230_s26 = scalar_lea.vmem %s859_s1, %s525_s22  ;;  %v258_v16 = vsel %vm250_vm3, %v248_v14, -inf }
  0x2a   : > { %v245_v8 = vld [vmem:[%s230_s26] sm:$0x3]  ;;  %v259_v18 = vrot.slane %v258_v16, 4  ;;  %v253_v19 = vmax.f32 %v251_v15, %v252_v17 }
  0x2b   : > { %v294_v9 = vrot.slane %v245_v8, %v293_v5  ;;  %v298_v10 = vrot.slane %v245_v8, %v297_v6 }
  0x2c   : > { %v260_v20 = vmax.f32 %v258_v16, %v259_v18  ;;  %v254_v21 = vrot.slane %v253_v19, 2 }
  0x2d   : > { %vm299_vm1 = vcmp.eq.s32.totalorder %v790_v3, %v294_v9  ;;  %vm300_vm2 = vcmp.eq.s32.totalorder %v790_v3, %v298_v10 }
  0x2e   : > { %v809_v11 = vsel %vm299_vm1, 1.0, %v683_v4  ;;  %v811_v12 = vsel %vm300_vm2, 1.0, %v683_v4  ;;  %v261_v22 = vrot.slane %v260_v20, 2  ;;  %v255_v23 = vmax.f32 %v253_v19, %v254_v21 }
  0x30   : > { %v262_v24 = vmax.f32 %v260_v20, %v261_v22  ;;  %v256_v25 = vrot.slane %v255_v23, 1 }
  0x32   : > { %v263_v26 = vrot.slane %v262_v24, 1  ;;  %v257_v27 = vmax.f32 %v255_v23, %v256_v25 }
  0x34   : > { %v264_v28 = vmax.f32 %v262_v24, %v263_v26 }
  0x36   : > { %v267_v29 = vcombine.low %v257_v27, %v264_v28 }
  0x38   : > { %v269_v30 = vsub.f32 %v244_v13, %v267_v29 }
  0x3a   : > { %v270_v31 = vmul.f32 1.442695, %v269_v30  ;;  %v306_v48 = vcombine.high %v269_v30, %v269_v30  ;;  %v308_v53 = vmul.f32 %v809_v11, %v269_v30 }
  0x3c   : > { %591 = vpow2.f32 %v270_v31  ;;  %v309_v54 = vmul.f32 %v811_v12, %v306_v48  ;;  %v310_v59 = vsel %vm250_vm3, %v308_v53, 0.0 }
  0x3d   : > { %v311_v63 = vrot.slane %v310_v59, 4 }
  0x3e   : > { %v317_v60 = vsel %vm250_vm3, %v309_v54, 0.0 }
  0x3f   : > { %v318_v0 = vrot.slane %v317_v60, 4  ;;  %v312_v7 = vadd.f32 %v311_v63, %v310_v59 }
  0x41   : > { %v319_v8 = vadd.f32 %v318_v0, %v317_v60  ;;  %v313_v13 = vrot.slane %v312_v7, 2 }
  0x43   : > { %v320_v14 = vrot.slane %v319_v8, 2  ;;  %v314_v20 = vadd.f32 %v313_v13, %v312_v7 }
  0x45   : > { %v321_v21 = vadd.f32 %v320_v14, %v319_v8  ;;  %v315_v30 = vrot.slane %v314_v20, 1 }
  0x47   : > { %v322_v31 = vrot.slane %v321_v21, 1 }
  0x49   : > { %v592_v32 = vpop.eup %591 }
  0x4a   : > { %v273_v33 = vcombine.high %v592_v32, %v592_v32  ;;  %v275_v34 = vsel %vm250_vm3, %v592_v32, 0.0  ;;  %v324_v42 = vmul.f32 %v592_v32, %v809_v11 }
  0x4b   : > { %v276_v36 = vrot.slane %v275_v34, 4 }
  0x4c   : > { %v282_v35 = vsel %vm250_vm3, %v273_v33, 0.0  ;;  %v325_v43 = vmul.f32 %v811_v12, %v273_v33  ;;  %v326_v46 = vsel %vm250_vm3, %v324_v42, 0.0 }
  0x4d   : > { %v283_v37 = vrot.slane %v282_v35, 4  ;;  %v277_v38 = vadd.f32 %v276_v36, %v275_v34  ;;  %v327_v51 = vrot.slane %v326_v46, 4 }
  0x4e   : > { %v333_v47 = vsel %vm250_vm3, %v325_v43, 0.0 }
  0x4f   : > { %v284_v39 = vadd.f32 %v283_v37, %v282_v35  ;;  %v278_v40 = vrot.slane %v277_v38, 2  ;;  %v334_v52 = vrot.slane %v333_v47, 4  ;;  %v328_v57 = vadd.f32 %v327_v51, %v326_v46 }
  0x51   : > { %v285_v41 = vrot.slane %v284_v39, 2  ;;  %v279_v44 = vadd.f32 %v278_v40, %v277_v38  ;;  %v335_v58 = vadd.f32 %v334_v52, %v333_v47  ;;  %v329_v61 = vrot.slane %v328_v57, 2 }
  0x53   : > { %v286_v45 = vadd.f32 %v285_v41, %v284_v39  ;;  %v280_v49 = vrot.slane %v279_v44, 1  ;;  %v336_v62 = vrot.slane %v335_v58, 2  ;;  %v330_v1 = vadd.f32 %v329_v61, %v328_v57 }
  0x54   : > { %v316_v39 = vadd.f32 %v315_v30, %v314_v20 }
  0x55   : > { %v287_v50 = vrot.slane %v286_v45, 1  ;;  %v281_v55 = vadd.f32 %v280_v49, %v279_v44  ;;  %v337_v4 = vadd.f32 %v336_v62, %v335_v58  ;;  %v331_v9 = vrot.slane %v330_v1, 1 }
  0x56   : > { %v684_v44 = vmov 1966171168  }
  0x57   : > { %v288_v56 = vadd.f32 %v287_v50, %v286_v45  ;;  %593 = vrcp.f32 %v281_v55  ;;  %v338_v10 = vrot.slane %v337_v4, 1  ;;  %v332_v17 = vadd.f32 %v331_v9, %v330_v1 }
  0x58   : > { %v388_v45 = vunpack.c.l.s4 %v684_v44 }
  0x59   : > { %595 = vrcp.f32 %v288_v56  ;;  %v339_v18 = vadd.f32 %v338_v10, %v337_v4  ;;  %v377_v4 = vld [vmem:[#allocation2] sm:$0x3] }
  0x5a   : > { %597 = vlog2.f32 %v281_v55  ;;  %v389_v54 = vunpack.c.0.s8 %v388_v45 }
  0x5b   : > { %599 = vlog2.f32 %v288_v56 }
  0x5c   : > { %v392_v61 = vsub.s32 %v389_v54, %v790_v3 }
  0x64   : > { %v594_v15 = vpop.eup %593 }
  0x65   : > { %v368_v28 = vmul.f32 %v594_v15, %v332_v17 }
  0x66   : > { %v596_v19 = vpop.eup %595 }
  0x67   : > { %v370_v29 = vmul.f32 %v596_v19, %v339_v18  ;;  %v598_v32 = vpop.eup %597  ;;  %v371_v38 = vsub.f32 1.0, %v368_v28 }
  0x68   : > { %v600_v35 = vpop.eup %599  ;;  %v362_v42 = vmul.f32 0.6931472, %v598_v32 }
  0x69   : > { %v364_v43 = vmul.f32 0.6931472, %v600_v35  ;;  %v373_v48 = vmax.f32 %v371_v38, 0.0 }
  0x6a   : > { %v365_v52 = vsub.f32 %v316_v39, %v362_v42 }
  0x6b   : > { %v375_v55 = vmul.f32 %v373_v48, %v373_v48 }
  0xa2   : > { %v343_v16 = vpop.permute.xlu0 %342 }
  0xa3   : > { %v345_v22 = vmul.f32 %v809_v11, %v343_v16  ;;  %v346_v23 = vmul.f32 %v811_v12, %v343_v16  ;;  %v372_v11 = vsub.f32 1.0, %v370_v29  ;;  %v323_v12 = vadd.f32 %v322_v31, %v321_v21 }
  0xa5   : > { %v347_v24 = vsel %vm250_vm3, %v345_v22, 0.0  ;;  %v354_v25 = vsel %vm250_vm3, %v346_v23, 0.0  ;;  %v374_v49 = vmax.f32 %v372_v11, 0.0  ;;  %v366_v53 = vsub.f32 %v323_v12, %v364_v43 }
  0xa6   : > { %v348_v26 = vrot.slane %v347_v24, 4  ;;  %v355_v27 = vrot.slane %v354_v25, 4 }
  0xa7   : > { %v376_v56 = vmul.f32 %v374_v49, %v374_v49 }
  0xa8   : > { %v349_v33 = vadd.f32 %v348_v26, %v347_v24  ;;  %v356_v34 = vadd.f32 %v355_v27, %v354_v25 }
  0xaa   : > { %v350_v36 = vrot.slane %v349_v33, 2  ;;  %v357_v37 = vrot.slane %v356_v34, 2 }
  0xac   : > { %v351_v40 = vadd.f32 %v350_v36, %v349_v33  ;;  %v358_v41 = vadd.f32 %v357_v37, %v356_v34 }
  0xae   : > { %v352_v46 = vrot.slane %v351_v40, 1  ;;  %v359_v47 = vrot.slane %v358_v41, 1 }
  0xb0   : > { %v353_v50 = vadd.f32 %v352_v46, %v351_v40  ;;  %v360_v51 = vadd.f32 %v359_v47, %v358_v41 }
  0xb2   : > { %v378_v57 = vsub.f32 0.0, %v353_v50  ;;  %v379_v58 = vsub.f32 0.0, %v360_v51 }
  0xb4   : > { %v380_v59 = vmul.f32 %v378_v57, %v365_v52  ;;  %v381_v60 = vmul.f32 %v379_v58, %v366_v53 }
  0xb6   : > { %v382_v62 = vmul.f32 %v380_v59, %v375_v55  ;;  %v383_v63 = vmul.f32 %v381_v60, %v376_v56 }
  0xb8   : > { %v386_v0 = vcombine.low %v382_v62, %v383_v63 }
  0xba   : > { %v393_v1 = vrot.slane %v386_v0, %v392_v61 }
  0xbc   : > { %v400_v7 = vrot.slane %v393_v1, %v392_v61 }
  0xbe   : > { %v402_v8 = vadd.f32 %v400_v7, %v377_v4 }
  0xc0   : > { %407 = vst.msk [vmem:[#allocation2] sm:$0x3] %vm786_vm0, %v402_v8 }
  0xc7   : > { %v411_v9 = vld [vmem:[#allocation2] sm:$0x3] }
  0xc8   : > { %v416_v10 = vrot.slane %v411_v9, %v293_v5  ;;  %v420_v13 = vrot.slane %v411_v9, %v297_v6 }
  0xca   : > { %v424_v14 = vsel %vm423_vm4, %v416_v10, 0.0  ;;  %v425_v15 = vsel %vm423_vm4, %v420_v13, 0.0 }
  0xcb   : > { %v426_v16 = vadd.f32 %v425_v15, %v424_v14 }
  0xcd   : > { %427 = vadd.xlane.f32.xlu0 %v426_v16 }
 0x156   : > { %v428_v17 = vpop.xlane.xlu0 %427 }
 0x157   : > { %430 = vst.msk [vmem:[%s234_s4] sm:$0x1] %vm429_vm5, %v428_v17 }
 0x158 PF: > { %s16_s17 = sadd.s32 1, %s679_s17   ;;  %s867_s12 = smov %s663_s13 }
 0x159   : > { %p13_p7 = scmp.ge.s32.totalorder %s16_s17, 4   ;;  %s868_s13 = smov %s667_s14 }
 0x15a   : > { %s869_s14 = smov %s754_s24  ;;  %s870_s15 = smov %s675_s16 }
 0x15b   : > { %s871_s16 = smov %s873_s19  ;;  %15 = sbr.rel (!%p13_p7) target bundleno = 4 (0x4), region = 83 }
 0x160   :  { %448 = vsyncpa [#allocation4], 1 }
 0x161   :  { %450 = vsyncpa [#allocation4 + $0x1], 1 }

</bundles_post_ra>
